<compile_context>
chip_gen: v5e
topology: v5e:2x2
jax: 0.10.0
libtpu: 0.0.40
codegen_flags: <defaults>
</compile_context>

<pallas_src>
import functools
import math

import jax
import jax.numpy as jnp
from jax import lax
from jax.experimental import pallas as pl
from jax.experimental.pallas import tpu as pltpu

LANE = 128


def _round_up(v, m):
    return (v + m - 1) // m * m


# ---------------------------------------------------------------------------
# Pallas kernel: one (batch, row-group) step
#   x_ref : (Cin, Lg)  zero-padded (mask*x) row-group slab, flattened spatial
#                      (row-major over the padded width Wp) on the lane axis
#   m_ref : (1,  Lg)   channel-presummed mask, same slab layout
#   w_ref : (kh*kw, Cout, Cin)  conv weight, tap-major
#   b_ref : (Cout, 1)  conv bias
#   o_ref : (Cout, Mt) renormalized conv output (lane-dense stores)
#   mo_ref: (1,  Mt)   mask indicator (broadcast to Cout in the wrapper)
# ---------------------------------------------------------------------------
def _parconv_kernel(x_ref, m_ref, w_ref, b_ref, o_ref, mo_ref, *, kh, kw, wp, mt):
    w_all = w_ref[...]                                   # (kh*kw, Cout, Cin), tiny

    acc = jnp.zeros(o_ref.shape, jnp.float32)            # (Cout, Mt)
    msum = jnp.zeros(mo_ref.shape, jnp.float32)          # (1,   Mt)

    # kh*kw shifted matmuls: tap (dh, dw) is a lane shift of dh*Wp + dw on the
    # flattened padded slab.  No im2col, no 9x HBM amplification.
    for dh in range(kh):
        for dw in range(kw):
            s = dh * wp + dw
            xs = x_ref[:, s:s + mt]                      # (Cin, Mt) shifted view
            acc = acc + jnp.dot(w_all[dh * kw + dw], xs,
                                preferred_element_type=jnp.float32)
            msum = msum + m_ref[:, s:s + mt]             # windowed mask count

    acc = acc + b_ref[...]                               # bias before renorm

    nz = msum != 0.0                                      # (1, Mt)
    safe = jnp.where(nz, msum, 1.0)
    inv = pl.reciprocal(safe, approx=True)                # EUP vrcp (free slot)
    inv = inv * (2.0 - safe * inv)                        # one Newton step -> f32-accurate
    o_ref[...] = jnp.where(nz, acc * inv, 0.0).astype(o_ref.dtype)
    mo_ref[...] = nz.astype(mo_ref.dtype)


# ---------------------------------------------------------------------------
# Wrapper: NCHW in / NCHW out, stride 1
# ---------------------------------------------------------------------------
@functools.partial(jax.jit, static_argnames=("padding",))
def par_conv_forward(x, mask, weight, bias, *, padding=1):
    """x, mask: (N, Cin, H, W) f32.  weight: (Cout, Cin, kh, kw).  bias: (Cout,)."""
    N, Cin, H, W = x.shape
    Cout, _, kh, kw = weight.shape
    Ho = H + 2 * padding - kh + 1
    Wo = W + 2 * padding - kw + 1
    Wp = W + 2 * padding
    assert Ho > 0 and Wo > 0

    # --- choose the number of row-groups R per image ---------------------
    def step_vmem_bytes(hg):
        mt = _round_up(hg * Wp, LANE)
        lg = _round_up(mt + (kh - 1) * Wp + (kw - 1), LANE)
        # double-buffered inputs + outputs + resident weight/bias
        return 2 * 4 * ((Cin + 1) * lg + (Cout + 1) * mt
                        + kh * kw * Cout * Cin + Cout)

    vmem_budget = 24 * (1 << 20)          # keep well inside v7x's 64 MiB
    R = 2 if N < 2 else 1                 # >= 2 parallel steps for v7x megacore
    while pl.cdiv(Ho, R) > 1 and step_vmem_bytes(pl.cdiv(Ho, R)) > vmem_budget:
        R *= 2

    Hg = pl.cdiv(Ho, R)                   # output rows per group
    Hs = Hg + kh - 1                      # padded rows needed per group (halo)
    Lg0 = Hs * Wp                         # real flattened slab length
    Mt = _round_up(Hg * Wp, LANE)         # lane-dense output width per group
    Lg = _round_up(Mt + (kh - 1) * Wp + (kw - 1), LANE)   # slab length incl. shift room

    # --- build padded, row-grouped, flattened slabs (no im2col) ----------
    H_ext = R * Hg + kh - 1
    pad_top = padding
    pad_bot = H_ext - H - padding
    xm = (mask * x).astype(jnp.float32)
    mrow = jnp.sum(mask, axis=1, keepdims=True).astype(jnp.float32)   # Cin presum

    def to_slabs(a):                      # (N, C, H, W) -> (N, C, R*Lg)
        c = a.shape[1]
        a = jnp.pad(a, ((0, 0), (0, 0), (pad_top, pad_bot), (padding, padding)))
        slabs = [a[:, :, g * Hg:g * Hg + Hs, :] for g in range(R)]
        s = jnp.stack(slabs, axis=2).reshape(N, c, R, Lg0)
        s = jnp.pad(s, ((0, 0), (0, 0), (0, 0), (0, Lg - Lg0)))
        return s.reshape(N, c, R * Lg)

    x_slabs = to_slabs(xm)
    m_slabs = to_slabs(mrow)
    w_taps = jnp.transpose(weight, (2, 3, 0, 1)).reshape(kh * kw, Cout, Cin)
    w_taps = w_taps.astype(jnp.float32)
    b2d = bias.reshape(Cout, 1).astype(jnp.float32)

    kernel = functools.partial(_parconv_kernel, kh=kh, kw=kw, wp=Wp, mt=Mt)

    cost = pl.CostEstimate(
        flops=int(2 * N * R * kh * kw * Cout * Cin * Mt),
        transcendentals=int(N * R * Mt),
        bytes_accessed=int(4 * (N * R * ((Cin + 1) * Lg + (Cout + 1) * Mt)
                                + kh * kw * Cout * Cin + Cout)),
    )
    vmem_limit = int(min(48 * (1 << 20),
                         max(16 * (1 << 20), 2 * step_vmem_bytes(Hg))))

    out3, mo3 = pl.pallas_call(
        kernel,
        out_shape=(
            jax.ShapeDtypeStruct((N, Cout, R * Mt), jnp.float32),
            jax.ShapeDtypeStruct((N, 1, R * Mt), jnp.float32),
        ),
        grid_spec=pltpu.PrefetchScalarGridSpec(
            num_scalar_prefetch=0,
            grid=(N, R),
            in_specs=[
                pl.BlockSpec((None, Cin, Lg), lambda n, g: (n, 0, g)),
                pl.BlockSpec((None, 1, Lg), lambda n, g: (n, 0, g)),
                pl.BlockSpec((kh * kw, Cout, Cin), lambda n, g: (0, 0, 0)),
                pl.BlockSpec((Cout, 1), lambda n, g: (0, 0)),
            ],
            out_specs=[
                pl.BlockSpec((None, Cout, Mt), lambda n, g: (n, 0, g)),
                pl.BlockSpec((None, 1, Mt), lambda n, g: (n, 0, g)),
            ],
        ),
        compiler_params=pltpu.CompilerParams(
            dimension_semantics=("parallel", "parallel"),
            vmem_limit_bytes=vmem_limit,
        ),
        cost_estimate=cost,
    )(x_slabs, m_slabs, w_taps, b2d)

    # --- reassemble: free reshapes + slices, no transposes ----------------
    out = out3.reshape(N, Cout, R, Mt)[:, :, :, :Hg * Wp]
    out = out.reshape(N, Cout, R, Hg, Wp)[:, :, :, :, :Wo]
    out = out.reshape(N, Cout, R * Hg, Wo)[:, :, :Ho, :]

    mo = mo3.reshape(N, 1, R, Mt)[:, :, :, :Hg * Wp]
    mo = mo.reshape(N, 1, R, Hg, Wp)[:, :, :, :, :Wo]
    mo = mo.reshape(N, 1, R * Hg, Wo)[:, :, :Ho, :]
    # Module semantics: mask is expanded to the conv output's channel count.
    # (Downstream code that only needs the 0/1 indicator can use `mo` itself.)
    m_out = jnp.broadcast_to(mo, (N, Cout, Ho, Wo))
    return out, m_out


# ---------------------------------------------------------------------------
# Pure-JAX reference (mirrors the PyTorch forward) for a sanity check
# ---------------------------------------------------------------------------
def par_conv_reference(x, mask, weight, bias, *, padding=1):
    dn = lax.conv_dimension_numbers(x.shape, weight.shape, ("NCHW", "OIHW", "NCHW"))
    xm = mask * x
    xc = lax.conv_general_dilated(xm, weight, (1, 1),
                                  [(padding, padding), (padding, padding)],
                                  dimension_numbers=dn)
    xc = xc + bias.reshape(1, -1, 1, 1)
    ones_w = jnp.ones_like(weight)
    mc = lax.conv_general_dilated(mask, ones_w, (1, 1),
                                  [(padding, padding), (padding, padding)],
                                  dimension_numbers=dn)
    nz = mc != 0.0
    out = jnp.where(nz, xc / jnp.where(nz, mc, 1.0), 0.0)
    m_out = jnp.where(nz, 1.0, 0.0)
    return out, m_out


if __name__ == "__main__":
    # Conv2d kwargs implied for the demo: in_channels=4, out_channels=8,
    # kernel_size=3, stride=1, padding=1
    N, Cin, H, W = 2, 4, 16, 16
    Cout, kh, kw = 8, 3, 3
    pad = 1

    key = jax.random.PRNGKey(0)
    kx, kmask, kw_key, kb_key = jax.random.split(key, 4)

    x = jax.random.normal(kx, (N, Cin, H, W), dtype=jnp.float32)
    # binary mask (holes), same shape as x
    mask = (jax.random.uniform(kmask, (N, Cin, H, W)) > 0.4).astype(jnp.float32)

    # main conv init: xavier_normal_(gain=sqrt(2)), bias ~ N(mean=0.02, std=1)
    fan_in = Cin * kh * kw
    fan_out = Cout * kh * kw
    xavier_std = math.sqrt(2.0) * math.sqrt(2.0 / (fan_in + fan_out))
    weight = xavier_std * jax.random.normal(kw_key, (Cout, Cin, kh, kw), jnp.float32)
    bias = 0.02 + jax.random.normal(kb_key, (Cout,), jnp.float32)
    # mask_conv weights are all-ones / zero-bias; realized analytically
    # (channel presum in the wrapper + kh*kw window sum in the kernel).

    out, mask_out = par_conv_forward(x, mask, weight, bias, padding=pad)
    jax.block_until_ready((out, mask_out))

    ref_out, ref_mask = par_conv_reference(x, mask, weight, bias, padding=pad)
    assert out.shape == (N, Cout, H, W) and mask_out.shape == (N, Cout, H, W)
    assert jnp.allclose(out, ref_out, rtol=1e-4, atol=1e-4)
    assert jnp.allclose(mask_out, ref_mask)

    print("KERNEL_OK")
</pallas_src>

<mosaic_0001>
module attributes {stable_mosaic.version = 11 : i64} {
  func.func @_parconv_kernel(%arg0: i32, %arg1: i32, %arg2: memref<1x4x512xf32, #tpu.memory_space<vmem>>, %arg3: memref<1x1x512xf32, #tpu.memory_space<vmem>>, %arg4: memref<9x8x4xf32, #tpu.memory_space<vmem>>, %arg5: memref<8x1xf32, #tpu.memory_space<vmem>>, %arg6: memref<1x8x384xf32, #tpu.memory_space<vmem>>, %arg7: memref<1x1x384xf32, #tpu.memory_space<vmem>>) attributes {dimension_semantics = [#tpu.dimension_semantics<parallel>, #tpu.dimension_semantics<parallel>], iteration_bounds = array<i64: 2, 1>, scalar_prefetch = 0 : i64, scratch_operands = 0 : i64, tpu.core_type = #tpu.core_type<tc>, window_params = [{transform_indices = @transform_0, window_bounds = array<i64: 1, 4, 512>}, {transform_indices = @transform_1, window_bounds = array<i64: 1, 1, 512>}, {pipeline_mode = #tpu.pipeline_mode<synchronous>, transform_indices = @transform_2, window_bounds = array<i64: 9, 8, 4>}, {pipeline_mode = #tpu.pipeline_mode<synchronous>, transform_indices = @transform_3, window_bounds = array<i64: 8, 1>}, {transform_indices = @transform_4, window_bounds = array<i64: 1, 8, 384>}, {transform_indices = @transform_5, window_bounds = array<i64: 1, 1, 384>}]} {
    %c0 = arith.constant 0 : index
    %c0_0 = arith.constant 0 : index
    %c0_1 = arith.constant 0 : index
    %0 = vector.load %arg4[%c0, %c0_0, %c0_1] : memref<9x8x4xf32, #tpu.memory_space<vmem>>, vector<9x8x4xf32>
    %cst = arith.constant 0.000000e+00 : f32
    %1 = vector.broadcast %cst : f32 to vector<8x384xf32>
    %cst_2 = arith.constant 0.000000e+00 : f32
    %2 = vector.broadcast %cst_2 : f32 to vector<1x384xf32>
    %c0_3 = arith.constant 0 : index
    %c0_4 = arith.constant 0 : index
    %c0_5 = arith.constant 0 : index
    %3 = vector.load %arg2[%c0_3, %c0_4, %c0_5] : memref<1x4x512xf32, #tpu.memory_space<vmem>>, vector<1x4x384xf32>
    %4 = vector.shape_cast %3 : vector<1x4x384xf32> to vector<4x384xf32>
    %5 = vector.extract_strided_slice %0 {offsets = [0, 0, 0], sizes = [1, 8, 4], strides = [1, 1, 1]} : vector<9x8x4xf32> to vector<1x8x4xf32>
    %6 = vector.shape_cast %5 : vector<1x8x4xf32> to vector<8x4xf32>
    %cst_6 = arith.constant dense<0.000000e+00> : vector<8x384xf32>
    %7 = tpu.matmul %6, %4, %cst_6 {dimension_numbers = #tpu.dot_dimension_numbers<[1], [0], [0], [1], [0, 0, 1, 1], [], []>} : vector<8x4xf32>, vector<4x384xf32>, vector<8x384xf32> -> vector<8x384xf32>
    %8 = arith.addf %1, %7 : vector<8x384xf32>
    %c0_7 = arith.constant 0 : index
    %c0_8 = arith.constant 0 : index
    %c0_9 = arith.constant 0 : index
    %9 = vector.load %arg3[%c0_7, %c0_8, %c0_9] : memref<1x1x512xf32, #tpu.memory_space<vmem>>, vector<1x1x384xf32>
    %10 = vector.shape_cast %9 : vector<1x1x384xf32> to vector<1x384xf32>
    %11 = arith.addf %2, %10 : vector<1x384xf32>
    %c0_10 = arith.constant 0 : index
    %c0_11 = arith.constant 0 : index
    %c1 = arith.constant 1 : index
    %12 = vector.load %arg2[%c0_10, %c0_11, %c1] : memref<1x4x512xf32, #tpu.memory_space<vmem>>, vector<1x4x384xf32>
    %13 = vector.shape_cast %12 : vector<1x4x384xf32> to vector<4x384xf32>
    %14 = vector.extract_strided_slice %0 {offsets = [1, 0, 0], sizes = [1, 8, 4], strides = [1, 1, 1]} : vector<9x8x4xf32> to vector<1x8x4xf32>
    %15 = vector.shape_cast %14 : vector<1x8x4xf32> to vector<8x4xf32>
    %cst_12 = arith.constant dense<0.000000e+00> : vector<8x384xf32>
    %16 = tpu.matmul %15, %13, %cst_12 {dimension_numbers = #tpu.dot_dimension_numbers<[1], [0], [0], [1], [0, 0, 1, 1], [], []>} : vector<8x4xf32>, vector<4x384xf32>, vector<8x384xf32> -> vector<8x384xf32>
    %17 = arith.addf %8, %16 : vector<8x384xf32>
    %c0_13 = arith.constant 0 : index
    %c0_14 = arith.constant 0 : index
    %c1_15 = arith.constant 1 : index
    %18 = vector.load %arg3[%c0_13, %c0_14, %c1_15] : memref<1x1x512xf32, #tpu.memory_space<vmem>>, vector<1x1x384xf32>
    %19 = vector.shape_cast %18 : vector<1x1x384xf32> to vector<1x384xf32>
    %20 = arith.addf %11, %19 : vector<1x384xf32>
    %c0_16 = arith.constant 0 : index
    %c0_17 = arith.constant 0 : index
    %c2 = arith.constant 2 : index
    %21 = vector.load %arg2[%c0_16, %c0_17, %c2] : memref<1x4x512xf32, #tpu.memory_space<vmem>>, vector<1x4x384xf32>
    %22 = vector.shape_cast %21 : vector<1x4x384xf32> to vector<4x384xf32>
    %23 = vector.extract_strided_slice %0 {offsets = [2, 0, 0], sizes = [1, 8, 4], strides = [1, 1, 1]} : vector<9x8x4xf32> to vector<1x8x4xf32>
    %24 = vector.shape_cast %23 : vector<1x8x4xf32> to vector<8x4xf32>
    %cst_18 = arith.constant dense<0.000000e+00> : vector<8x384xf32>
    %25 = tpu.matmul %24, %22, %cst_18 {dimension_numbers = #tpu.dot_dimension_numbers<[1], [0], [0], [1], [0, 0, 1, 1], [], []>} : vector<8x4xf32>, vector<4x384xf32>, vector<8x384xf32> -> vector<8x384xf32>
    %26 = arith.addf %17, %25 : vector<8x384xf32>
    %c0_19 = arith.constant 0 : index
    %c0_20 = arith.constant 0 : index
    %c2_21 = arith.constant 2 : index
    %27 = vector.load %arg3[%c0_19, %c0_20, %c2_21] : memref<1x1x512xf32, #tpu.memory_space<vmem>>, vector<1x1x384xf32>
    %28 = vector.shape_cast %27 : vector<1x1x384xf32> to vector<1x384xf32>
    %29 = arith.addf %20, %28 : vector<1x384xf32>
    %c0_22 = arith.constant 0 : index
    %c0_23 = arith.constant 0 : index
    %c18 = arith.constant 18 : index
    %30 = vector.load %arg2[%c0_22, %c0_23, %c18] : memref<1x4x512xf32, #tpu.memory_space<vmem>>, vector<1x4x384xf32>
    %31 = vector.shape_cast %30 : vector<1x4x384xf32> to vector<4x384xf32>
    %32 = vector.extract_strided_slice %0 {offsets = [3, 0, 0], sizes = [1, 8, 4], strides = [1, 1, 1]} : vector<9x8x4xf32> to vector<1x8x4xf32>
    %33 = vector.shape_cast %32 : vector<1x8x4xf32> to vector<8x4xf32>
    %cst_24 = arith.constant dense<0.000000e+00> : vector<8x384xf32>
    %34 = tpu.matmul %33, %31, %cst_24 {dimension_numbers = #tpu.dot_dimension_numbers<[1], [0], [0], [1], [0, 0, 1, 1], [], []>} : vector<8x4xf32>, vector<4x384xf32>, vector<8x384xf32> -> vector<8x384xf32>
    %35 = arith.addf %26, %34 : vector<8x384xf32>
    %c0_25 = arith.constant 0 : index
    %c0_26 = arith.constant 0 : index
    %c18_27 = arith.constant 18 : index
    %36 = vector.load %arg3[%c0_25, %c0_26, %c18_27] : memref<1x1x512xf32, #tpu.memory_space<vmem>>, vector<1x1x384xf32>
    %37 = vector.shape_cast %36 : vector<1x1x384xf32> to vector<1x384xf32>
    %38 = arith.addf %29, %37 : vector<1x384xf32>
    %c0_28 = arith.constant 0 : index
    %c0_29 = arith.constant 0 : index
    %c19 = arith.constant 19 : index
    %39 = vector.load %arg2[%c0_28, %c0_29, %c19] : memref<1x4x512xf32, #tpu.memory_space<vmem>>, vector<1x4x384xf32>
    %40 = vector.shape_cast %39 : vector<1x4x384xf32> to vector<4x384xf32>
    %41 = vector.extract_strided_slice %0 {offsets = [4, 0, 0], sizes = [1, 8, 4], strides = [1, 1, 1]} : vector<9x8x4xf32> to vector<1x8x4xf32>
    %42 = vector.shape_cast %41 : vector<1x8x4xf32> to vector<8x4xf32>
    %cst_30 = arith.constant dense<0.000000e+00> : vector<8x384xf32>
    %43 = tpu.matmul %42, %40, %cst_30 {dimension_numbers = #tpu.dot_dimension_numbers<[1], [0], [0], [1], [0, 0, 1, 1], [], []>} : vector<8x4xf32>, vector<4x384xf32>, vector<8x384xf32> -> vector<8x384xf32>
    %44 = arith.addf %35, %43 : vector<8x384xf32>
    %c0_31 = arith.constant 0 : index
    %c0_32 = arith.constant 0 : index
    %c19_33 = arith.constant 19 : index
    %45 = vector.load %arg3[%c0_31, %c0_32, %c19_33] : memref<1x1x512xf32, #tpu.memory_space<vmem>>, vector<1x1x384xf32>
    %46 = vector.shape_cast %45 : vector<1x1x384xf32> to vector<1x384xf32>
    %47 = arith.addf %38, %46 : vector<1x384xf32>
    %c0_34 = arith.constant 0 : index
    %c0_35 = arith.constant 0 : index
    %c20 = arith.constant 20 : index
    %48 = vector.load %arg2[%c0_34, %c0_35, %c20] : memref<1x4x512xf32, #tpu.memory_space<vmem>>, vector<1x4x384xf32>
    %49 = vector.shape_cast %48 : vector<1x4x384xf32> to vector<4x384xf32>
    %50 = vector.extract_strided_slice %0 {offsets = [5, 0, 0], sizes = [1, 8, 4], strides = [1, 1, 1]} : vector<9x8x4xf32> to vector<1x8x4xf32>
    %51 = vector.shape_cast %50 : vector<1x8x4xf32> to vector<8x4xf32>
    %cst_36 = arith.constant dense<0.000000e+00> : vector<8x384xf32>
    %52 = tpu.matmul %51, %49, %cst_36 {dimension_numbers = #tpu.dot_dimension_numbers<[1], [0], [0], [1], [0, 0, 1, 1], [], []>} : vector<8x4xf32>, vector<4x384xf32>, vector<8x384xf32> -> vector<8x384xf32>
    %53 = arith.addf %44, %52 : vector<8x384xf32>
    %c0_37 = arith.constant 0 : index
    %c0_38 = arith.constant 0 : index
    %c20_39 = arith.constant 20 : index
    %54 = vector.load %arg3[%c0_37, %c0_38, %c20_39] : memref<1x1x512xf32, #tpu.memory_space<vmem>>, vector<1x1x384xf32>
    %55 = vector.shape_cast %54 : vector<1x1x384xf32> to vector<1x384xf32>
    %56 = arith.addf %47, %55 : vector<1x384xf32>
    %c0_40 = arith.constant 0 : index
    %c0_41 = arith.constant 0 : index
    %c36 = arith.constant 36 : index
    %57 = vector.load %arg2[%c0_40, %c0_41, %c36] : memref<1x4x512xf32, #tpu.memory_space<vmem>>, vector<1x4x384xf32>
    %58 = vector.shape_cast %57 : vector<1x4x384xf32> to vector<4x384xf32>
    %59 = vector.extract_strided_slice %0 {offsets = [6, 0, 0], sizes = [1, 8, 4], strides = [1, 1, 1]} : vector<9x8x4xf32> to vector<1x8x4xf32>
    %60 = vector.shape_cast %59 : vector<1x8x4xf32> to vector<8x4xf32>
    %cst_42 = arith.constant dense<0.000000e+00> : vector<8x384xf32>
    %61 = tpu.matmul %60, %58, %cst_42 {dimension_numbers = #tpu.dot_dimension_numbers<[1], [0], [0], [1], [0, 0, 1, 1], [], []>} : vector<8x4xf32>, vector<4x384xf32>, vector<8x384xf32> -> vector<8x384xf32>
    %62 = arith.addf %53, %61 : vector<8x384xf32>
    %c0_43 = arith.constant 0 : index
    %c0_44 = arith.constant 0 : index
    %c36_45 = arith.constant 36 : index
    %63 = vector.load %arg3[%c0_43, %c0_44, %c36_45] : memref<1x1x512xf32, #tpu.memory_space<vmem>>, vector<1x1x384xf32>
    %64 = vector.shape_cast %63 : vector<1x1x384xf32> to vector<1x384xf32>
    %65 = arith.addf %56, %64 : vector<1x384xf32>
    %c0_46 = arith.constant 0 : index
    %c0_47 = arith.constant 0 : index
    %c37 = arith.constant 37 : index
    %66 = vector.load %arg2[%c0_46, %c0_47, %c37] : memref<1x4x512xf32, #tpu.memory_space<vmem>>, vector<1x4x384xf32>
    %67 = vector.shape_cast %66 : vector<1x4x384xf32> to vector<4x384xf32>
    %68 = vector.extract_strided_slice %0 {offsets = [7, 0, 0], sizes = [1, 8, 4], strides = [1, 1, 1]} : vector<9x8x4xf32> to vector<1x8x4xf32>
    %69 = vector.shape_cast %68 : vector<1x8x4xf32> to vector<8x4xf32>
    %cst_48 = arith.constant dense<0.000000e+00> : vector<8x384xf32>
    %70 = tpu.matmul %69, %67, %cst_48 {dimension_numbers = #tpu.dot_dimension_numbers<[1], [0], [0], [1], [0, 0, 1, 1], [], []>} : vector<8x4xf32>, vector<4x384xf32>, vector<8x384xf32> -> vector<8x384xf32>
    %71 = arith.addf %62, %70 : vector<8x384xf32>
    %c0_49 = arith.constant 0 : index
    %c0_50 = arith.constant 0 : index
    %c37_51 = arith.constant 37 : index
    %72 = vector.load %arg3[%c0_49, %c0_50, %c37_51] : memref<1x1x512xf32, #tpu.memory_space<vmem>>, vector<1x1x384xf32>
    %73 = vector.shape_cast %72 : vector<1x1x384xf32> to vector<1x384xf32>
    %74 = arith.addf %65, %73 : vector<1x384xf32>
    %c0_52 = arith.constant 0 : index
    %c0_53 = arith.constant 0 : index
    %c38 = arith.constant 38 : index
    %75 = vector.load %arg2[%c0_52, %c0_53, %c38] : memref<1x4x512xf32, #tpu.memory_space<vmem>>, vector<1x4x384xf32>
    %76 = vector.shape_cast %75 : vector<1x4x384xf32> to vector<4x384xf32>
    %77 = vector.extract_strided_slice %0 {offsets = [8, 0, 0], sizes = [1, 8, 4], strides = [1, 1, 1]} : vector<9x8x4xf32> to vector<1x8x4xf32>
    %78 = vector.shape_cast %77 : vector<1x8x4xf32> to vector<8x4xf32>
    %cst_54 = arith.constant dense<0.000000e+00> : vector<8x384xf32>
    %79 = tpu.matmul %78, %76, %cst_54 {dimension_numbers = #tpu.dot_dimension_numbers<[1], [0], [0], [1], [0, 0, 1, 1], [], []>} : vector<8x4xf32>, vector<4x384xf32>, vector<8x384xf32> -> vector<8x384xf32>
    %80 = arith.addf %71, %79 : vector<8x384xf32>
    %c0_55 = arith.constant 0 : index
    %c0_56 = arith.constant 0 : index
    %c38_57 = arith.constant 38 : index
    %81 = vector.load %arg3[%c0_55, %c0_56, %c38_57] : memref<1x1x512xf32, #tpu.memory_space<vmem>>, vector<1x1x384xf32>
    %82 = vector.shape_cast %81 : vector<1x1x384xf32> to vector<1x384xf32>
    %83 = arith.addf %74, %82 : vector<1x384xf32>
    %c0_58 = arith.constant 0 : index
    %c0_59 = arith.constant 0 : index
    %84 = vector.load %arg5[%c0_58, %c0_59] : memref<8x1xf32, #tpu.memory_space<vmem>>, vector<8x1xf32>
    %85 = vector.broadcast %84 : vector<8x1xf32> to vector<8x384xf32>
    %86 = arith.addf %80, %85 : vector<8x384xf32>
    %cst_60 = arith.constant 0.000000e+00 : f32
    %87 = vector.broadcast %cst_60 : f32 to vector<1x384xf32>
    %88 = arith.cmpf one, %83, %87 : vector<1x384xf32>
    %cst_61 = arith.constant 1.000000e+00 : f32
    %89 = vector.broadcast %cst_61 : f32 to vector<1x384xf32>
    %90 = arith.select %88, %83, %89 : vector<1x384xi1>, vector<1x384xf32>
    %91 = tpu.reciprocal %90 {approx = true} : vector<1x384xf32> -> vector<1x384xf32>
    %92 = arith.mulf %90, %91 : vector<1x384xf32>
    %cst_62 = arith.constant 2.000000e+00 : f32
    %93 = vector.broadcast %cst_62 : f32 to vector<1x384xf32>
    %94 = arith.subf %93, %92 : vector<1x384xf32>
    %95 = arith.mulf %91, %94 : vector<1x384xf32>
    %96 = vector.broadcast %95 : vector<1x384xf32> to vector<8x384xf32>
    %97 = arith.mulf %86, %96 : vector<8x384xf32>
    %cst_63 = arith.constant 0.000000e+00 : f32
    %98 = vector.shape_cast %88 : vector<1x384xi1> to vector<1x384xi1>
    %99 = vector.broadcast %98 : vector<1x384xi1> to vector<8x384xi1>
    %100 = vector.broadcast %cst_63 : f32 to vector<8x384xf32>
    %101 = arith.select %99, %97, %100 : vector<8x384xi1>, vector<8x384xf32>
    %c0_64 = arith.constant 0 : index
    %c0_65 = arith.constant 0 : index
    %c0_66 = arith.constant 0 : index
    %102 = vector.load %arg6[%c0_64, %c0_65, %c0_66] : memref<1x8x384xf32, #tpu.memory_space<vmem>>, vector<1x8x384xf32>
    %103 = vector.shape_cast %102 : vector<1x8x384xf32> to vector<8x384xf32>
    %104 = vector.shape_cast %101 : vector<8x384xf32> to vector<1x8x384xf32>
    tpu.vector_store %arg6[%c0_64, %c0_65, %c0_66], %104 {strides = array<i32>} : memref<1x8x384xf32, #tpu.memory_space<vmem>>, vector<1x8x384xf32>,
    %105 = arith.extui %88 : vector<1x384xi1> to vector<1x384xi32>
    %106 = arith.sitofp %105 : vector<1x384xi32> to vector<1x384xf32>
    %c0_67 = arith.constant 0 : index
    %c0_68 = arith.constant 0 : index
    %c0_69 = arith.constant 0 : index
    %107 = vector.load %arg7[%c0_67, %c0_68, %c0_69] : memref<1x1x384xf32, #tpu.memory_space<vmem>>, vector<1x1x384xf32>
    %108 = vector.shape_cast %107 : vector<1x1x384xf32> to vector<1x384xf32>
    %109 = vector.shape_cast %106 : vector<1x384xf32> to vector<1x1x384xf32>
    tpu.vector_store %arg7[%c0_67, %c0_68, %c0_69], %109 {strides = array<i32>} : memref<1x1x384xf32, #tpu.memory_space<vmem>>, vector<1x1x384xf32>,
    return
  }
  func.func @transform_0(%arg0: i32, %arg1: i32) -> (i32, i32, i32) {
    %c0_i32 = arith.constant 0 : i32
    %c0_i32_0 = arith.constant 0 : i32
    return %arg0, %c0_i32, %arg1 : i32, i32, i32
  }
  func.func @transform_1(%arg0: i32, %arg1: i32) -> (i32, i32, i32) {
    %c0_i32 = arith.constant 0 : i32
    %c0_i32_0 = arith.constant 0 : i32
    return %arg0, %c0_i32, %arg1 : i32, i32, i32
  }
  func.func @transform_2(%arg0: i32, %arg1: i32) -> (i32, i32, i32) {
    %c0_i32 = arith.constant 0 : i32
    %c0_i32_0 = arith.constant 0 : i32
    %c0_i32_1 = arith.constant 0 : i32
    %c0_i32_2 = arith.constant 0 : i32
    return %c0_i32, %c0_i32_0, %c0_i32_1 : i32, i32, i32
  }
  func.func @transform_3(%arg0: i32, %arg1: i32) -> (i32, i32) {
    %c0_i32 = arith.constant 0 : i32
    %c0_i32_0 = arith.constant 0 : i32
    %c0_i32_1 = arith.constant 0 : i32
    return %c0_i32, %c0_i32_0 : i32, i32
  }
  func.func @transform_4(%arg0: i32, %arg1: i32) -> (i32, i32, i32) {
    %c0_i32 = arith.constant 0 : i32
    %c0_i32_0 = arith.constant 0 : i32
    return %arg0, %c0_i32, %arg1 : i32, i32, i32
  }
  func.func @transform_5(%arg0: i32, %arg1: i32) -> (i32, i32, i32) {
    %c0_i32 = arith.constant 0 : i32
    %c0_i32_0 = arith.constant 0 : i32
    return %arg0, %c0_i32, %arg1 : i32, i32, i32
  }
}

</mosaic_0001>

<bundles_post_ra>
// kernel: par_conv_forward.1
= control target key start
LH: loop header
LB: loop body
LE: loop exit
PB: predicated region body
PF: predicated region fallthrough
CT: control target
= control target key end

     0   :  { %s1593_s18 = smov 0   ;;  %s1595_s19 = smov 0   ;;  %s1841_s0 = inlined_call_operand.vmem [shape: f32[2,4,512], index: 0, kind: input, shape index: {}]   ;;  %s1842_s1 = inlined_call_operand.vmem [shape: f32[2,1,512], index: 1, kind: input, shape index: {}]   ;;  %s1843_s2 = inlined_call_operand.vmem [shape: f32[9,8,4], index: 2, kind: input, shape index: {}]   ;;  %s1844_s3 = inlined_call_operand.vmem [shape: f32[8,1], index: 3, kind: input, shape index: {}]   ;;  %s1845_s4 = inlined_call_operand.vmem [shape: f32[2,8,384], index: 4, kind: output, shape index: {0}]   ;;  %s1846_s5 = inlined_call_operand.vmem [shape: f32[2,1,384], index: 5, kind: output, shape index: {1}]  }
   0x1   :  { %s1597_s20 = smov 0  }
   0x2 LB: > { %s28_s21 = sadd.s32 1, %s1547_s19  ;;  %p1426_p0 = scmp.ge.s32.totalorder %s1551_s20, 1  ;;  %s1551_s20 = sphi %s1597_s20, %s16_s20   ;;  %s1547_s19 = sphi %s1595_s19, %s1848_s19   ;;  %s1543_s18 = sphi %s1593_s18, %s1847_s18  }
   0x3   : > { %p30_p1 = scmp.ge.s32.totalorder %s28_s21, 2  ;;  %p229_p2 = scmp.lt.s32.totalorder %s1551_s20, 3 }
   0x5   : > { %s1850_s21 = smov (%p30_p1, %s28_s21), 0  ;;  %p230_p3 = pnand %p1426_p0, %p229_p2 }
   0x6   : > { %p282_p4 = scmp.lt.s32.totalorder (!%p230_p3), %s1543_s18, 1  ;;  %s1553_s26 = smov (!%p230_p3), 127  }
   0x7   : > { %233 = sbr.rel (%p230_p3) target bundleno = 366 (0x16e), region = 36  ;;  %s1554_s27 = smov (!%p230_p3), 126  }
   0x8   : > { %s1555_s28 = smov (!%p230_p3), 110   ;;  %s1556_s29 = smov (!%p230_p3), 109  }
   0x9   : > { %s1557_s30 = smov (!%p230_p3), 108   ;;  %s1558_s6 = smov (!%p230_p3), 92  }
   0xa   : > { %s1559_s7 = smov (!%p230_p3), 91   ;;  %s1560_s8 = smov (!%p230_p3), 90  }
   0xc   : > { %s1852_s18 = smov (!%p282_p4, %s1543_s18), 1  ;;  %vm359_vm0 = vcmask 1043456   ;;  %vm355_vm1 = vcmask 31744   ;;  %v319_v39 = vld [vmem:[%s1843_s2] sm:$0xff]  ;;  %vm351_vm2 = vcmask 1039360   ;;  %vm530_vm3 = vcmask 1031168  }
   0xd   : > { %s1488_s22 = sshll.u32 %s1852_s18, 4  ;;  %v320_v50 = vld [vmem:[%s1843_s2 + $0x8] sm:$0xff]  ;;  %s1429_s13 = sshll.u32 %s1852_s18, 2  ;;  %vm633_vm4 = vcmask 900096   ;;  %v321_v54 = vld [vmem:[%s1843_s2 + $0x10] sm:$0xff]  ;;  %v322_v61 = vld [vmem:[%s1843_s2 + $0x18] sm:$0xff] }
   0xe   : > { %s289_s25 = scalar_lea.vmem %s1841_s0, %s1488_s22  ;;  %s1712_s22 = scalar_lea.vmem %s1842_s1, %s1429_s13  ;;  %vm736_vm5 = vcmask 891904   ;;  %vm839_vm6 = vcmask 883712   ;;  %vm942_vm7 = vcmask 752640   ;;  %vm1045_vm8 = vcmask 744448  }
   0xf   : > { %v1617_v0 = vld [vmem:[%s289_s25 + $0x8] sm:$0xff]  ;;  %v1619_v1 = vld [vmem:[%s289_s25] sm:$0xff]  ;;  %vm1148_vm9 = vcmask 736256   ;;  %s1490_s12 = smul.u32 3, %s1852_s18 }
  0x10   : > { %338 = vst [vmem:[#allocation1 + $0x10] ss:$2 sm:$0xff] %v1617_v0  ;;  %v329_v2 = vld [vmem:[%s289_s25 + $0x8] sm:$0xf]  ;;  %v606_v56 = vld [vmem:[%s1712_s22] sm:$0xf] }
  0x11   : > { %336 = vst [vmem:[#allocation1] ss:$2 sm:$0xff] %v1619_v1  ;;  %v709_v63 = vld [vmem:[%s1712_s22] sm:$0xf]  ;;  %s317_s15 = scalar_lea.vmem %s1846_s5, %s1490_s12  ;;  %s1489_s16 = smul.u32 24, %s1852_s18 }
  0x13   : > { %s308_s23 = scalar_lea.vmem %s1845_s4, %s1489_s16 }
  0x17   : > { %v341_v3 = vld.sshfl [vmem:[#allocation1 + $0x10] sm:$0xff pattern:$0x75316420]  ;;  %v342_v4 = vld.sshfl [vmem:[#allocation1 + $0x18] sm:$0xff pattern:$0x75316420] }
  0x18   : > { %347 = vrot.lane.b32.xlu0 %v341_v3, %s1553_s26  ;;  %v339_v5 = vld.sshfl [vmem:[#allocation1] sm:$0xff pattern:$0x75316420]  ;;  %430 = vst [vmem:[#allocation1 + $0x10] ss:$2 sm:$0xff] %v329_v2 }
  0x19   : > { %343 = vrot.lane.b32.xlu1 %v339_v5, %s1553_s26  ;;  %v340_v6 = vld.sshfl [vmem:[#allocation1 + $0x8] sm:$0xff pattern:$0x75316420]  ;;  %v1018_v5 = vld [vmem:[%s1712_s22] sm:$0xf] }
  0x1a   : > { %428 = vst [vmem:[#allocation1] ss:$2 sm:$0xff] %v1619_v1 }
  0x1f   : > { %v1626_v7 = vld.sshfl [vmem:[#allocation1 + $0x10] sm:$0xff pattern:$0x75316420] }
  0x20   : > { %349 = vrot.lane.b32.xlu0 %v342_v4, %s1553_s26  ;;  %517 = vst [vmem:[#allocation1 + $0x10] ss:$2 sm:$0xff] %v1617_v0 }
  0x21   : > { %345 = vrot.lane.b32.xlu1 %v340_v6, %s1553_s26  ;;  %v1631_v8 = vld.sshfl [vmem:[#allocation1] sm:$0xff pattern:$0x75316420]  ;;  %v1633_v9 = vld.sshfl [vmem:[#allocation1 + $0x8] sm:$0xff pattern:$0x75316420] }
  0x22   : > { %515 = vst [vmem:[#allocation1] ss:$2 sm:$0xff] %v1619_v1  ;;  %1437 = vmatpush.msk.msra.mxu3 %vm359_vm0, %v1631_v8  ;;  %v1224_v6 = vld [vmem:[%s1712_s22] sm:$0xf] }
  0x23   : > { %1438 = vmatmul.msk.f32.vlgmr.msra.gmra.mxu3 %vm355_vm1, %v319_v39  ;;  %v323_v8 = vld [vmem:[%s1843_s2 + $0x20] sm:$0xff] }
  0x27   : > { %v520_v10 = vld.sshfl [vmem:[#allocation1 + $0x10] sm:$0xff pattern:$0x75316420]  ;;  %v521_v11 = vld.sshfl [vmem:[#allocation1 + $0x18] sm:$0xff pattern:$0x75316420] }
  0x28   : > { %526 = vrot.lane.b32.xlu0 %v520_v10, %s1554_s27  ;;  %620 = vst [vmem:[#allocation1 + $0x10] ss:$2 sm:$0xff] %v1617_v0 }
  0x29   : > { %v518_v12 = vld.sshfl [vmem:[#allocation1] sm:$0xff pattern:$0x75316420]  ;;  %v519_v13 = vld.sshfl [vmem:[#allocation1 + $0x8] sm:$0xff pattern:$0x75316420] }
  0x2a   : > { %522 = vrot.lane.b32.xlu2 %v518_v12, %s1554_s27  ;;  %618 = vst [vmem:[#allocation1] ss:$2 sm:$0xff] %v1619_v1 }
  0x2f   : > { %v623_v14 = vld.sshfl [vmem:[#allocation1 + $0x10] sm:$0xff pattern:$0x75316420]  ;;  %v624_v15 = vld.sshfl [vmem:[#allocation1 + $0x18] sm:$0xff pattern:$0x75316420] }
  0x30   : > { %528 = vrot.lane.b32.xlu0 %v521_v11, %s1554_s27  ;;  %723 = vst [vmem:[#allocation1 + $0x10] ss:$2 sm:$0xff] %v1617_v0 }
  0x31   : > { %v622_v16 = vld.sshfl [vmem:[#allocation1 + $0x8] sm:$0xff pattern:$0x75316420]  ;;  %v621_v17 = vld.sshfl [vmem:[#allocation1] sm:$0xff pattern:$0x75316420] }
  0x32   : > { %627 = vrot.lane.b32.xlu1 %v622_v16, %s1555_s28  ;;  %524 = vrot.lane.b32.xlu2 %v519_v13, %s1554_s27  ;;  %721 = vst [vmem:[#allocation1] ss:$2 sm:$0xff] %v1619_v1 }
  0x37   : > { %v726_v18 = vld.sshfl [vmem:[#allocation1 + $0x10] sm:$0xff pattern:$0x75316420]  ;;  %v727_v19 = vld.sshfl [vmem:[#allocation1 + $0x18] sm:$0xff pattern:$0x75316420] }
  0x38   : > { %732 = vrot.lane.b32.xlu0 %v726_v18, %s1556_s29  ;;  %826 = vst [vmem:[#allocation1 + $0x10] ss:$2 sm:$0xff] %v1617_v0 }
  0x39   : > { %v724_v20 = vld.sshfl [vmem:[#allocation1] sm:$0xff pattern:$0x75316420]  ;;  %v725_v21 = vld.sshfl [vmem:[#allocation1 + $0x8] sm:$0xff pattern:$0x75316420] }
  0x3a   : > { %625 = vrot.lane.b32.xlu1 %v621_v17, %s1555_s28  ;;  %629 = vrot.lane.b32.xlu2 %v623_v14, %s1555_s28  ;;  %824 = vst [vmem:[#allocation1] ss:$2 sm:$0xff] %v1619_v1  ;;  %v324_v17 = vld [vmem:[%s1843_s2 + $0x28] sm:$0xff] }
  0x3f   : > { %v829_v22 = vld.sshfl [vmem:[#allocation1 + $0x10] sm:$0xff pattern:$0x75316420]  ;;  %v830_v23 = vld.sshfl [vmem:[#allocation1 + $0x18] sm:$0xff pattern:$0x75316420] }
  0x40   : > { %730 = vrot.lane.b32.xlu0 %v725_v21, %s1556_s29  ;;  %929 = vst [vmem:[#allocation1 + $0x10] ss:$2 sm:$0xff] %v1617_v0 }
  0x41   : > { %v827_v24 = vld.sshfl [vmem:[#allocation1] sm:$0xff pattern:$0x75316420]  ;;  %v828_v25 = vld.sshfl [vmem:[#allocation1 + $0x8] sm:$0xff pattern:$0x75316420] }
  0x42   : > { %734 = vrot.lane.b32.xlu1 %v727_v19, %s1556_s29  ;;  %631 = vrot.lane.b32.xlu2 %v624_v15, %s1555_s28  ;;  %927 = vst [vmem:[#allocation1] ss:$2 sm:$0xff] %v1619_v1  ;;  %v503_v15 = vld [vmem:[%s1712_s22] sm:$0xf] }
  0x47   : > { %v932_v26 = vld.sshfl [vmem:[#allocation1 + $0x10] sm:$0xff pattern:$0x75316420]  ;;  %v933_v27 = vld.sshfl [vmem:[#allocation1 + $0x18] sm:$0xff pattern:$0x75316420] }
  0x48   : > { %837 = vrot.lane.b32.xlu0 %v830_v23, %s1557_s30  ;;  %1032 = vst [vmem:[#allocation1 + $0x10] ss:$2 sm:$0xff] %v1617_v0 }
  0x49   : > { %v931_v28 = vld.sshfl [vmem:[#allocation1 + $0x8] sm:$0xff pattern:$0x75316420]  ;;  %v930_v29 = vld.sshfl [vmem:[#allocation1] sm:$0xff pattern:$0x75316420] }
  0x4a   : > { %831 = vrot.lane.b32.xlu1 %v827_v24, %s1557_s30  ;;  %728 = vrot.lane.b32.xlu2 %v724_v20, %s1556_s29  ;;  %1030 = vst [vmem:[#allocation1] ss:$2 sm:$0xff] %v1619_v1 }
  0x4f   : > { %v1035_v30 = vld.sshfl [vmem:[#allocation1 + $0x10] sm:$0xff pattern:$0x75316420]  ;;  %v1036_v31 = vld.sshfl [vmem:[#allocation1 + $0x18] sm:$0xff pattern:$0x75316420] }
  0x50   : > { %934 = vrot.lane.b32.xlu0 %v930_v29, %s1558_s6  ;;  %1135 = vst [vmem:[#allocation1 + $0x10] ss:$2 sm:$0xff] %v1617_v0  ;;  %v915_v0 = vld [vmem:[%s1712_s22] sm:$0xf] }
  0x51   : > { %v1034_v32 = vld.sshfl [vmem:[#allocation1 + $0x8] sm:$0xff pattern:$0x75316420]  ;;  %v1033_v33 = vld.sshfl [vmem:[#allocation1] sm:$0xff pattern:$0x75316420] }
  0x52   : > { %936 = vrot.lane.b32.xlu1 %v931_v28, %s1558_s6  ;;  %833 = vrot.lane.b32.xlu2 %v828_v25, %s1557_s30  ;;  %1133 = vst [vmem:[#allocation1] ss:$2 sm:$0xff] %v1619_v1  ;;  %v325_v25 = vld [vmem:[%s1843_s2 + $0x30] sm:$0xff] }
  0x57   : > { %v1138_v35 = vld.sshfl [vmem:[#allocation1 + $0x10] sm:$0xff pattern:$0x75316420]  ;;  %v1139_v37 = vld.sshfl [vmem:[#allocation1 + $0x18] sm:$0xff pattern:$0x75316420] }
  0x58   : > { %1041 = vrot.lane.b32.xlu0 %v1035_v30, %s1559_s7  ;;  %v1121_v30 = vld [vmem:[%s1712_s22] sm:$0xf] }
  0x59   : > { %v1136_v34 = vld.sshfl [vmem:[#allocation1] sm:$0xff pattern:$0x75316420]  ;;  %v1137_v36 = vld.sshfl [vmem:[#allocation1 + $0x8] sm:$0xff pattern:$0x75316420] }
  0x5a   : > { %938 = vrot.lane.b32.xlu1 %v932_v26, %s1558_s6  ;;  %835 = vrot.lane.b32.xlu2 %v829_v22, %s1557_s30  ;;  %v812_v22 = vld [vmem:[%s1712_s22] sm:$0xf] }
  0x60   : > { %1043 = vrot.lane.b32.xlu0 %v1036_v31, %s1559_s7  ;;  %v1232_v31 = vld [vmem:[%s1844_s3] sm:$0xff] }
  0x62   : > { %940 = vrot.lane.b32.xlu1 %v933_v27, %s1558_s6  ;;  %1039 = vrot.lane.b32.xlu2 %v1034_v32, %s1559_s7  ;;  %v326_v27 = vld [vmem:[%s1843_s2 + $0x38] sm:$0xff]  ;;  %v1561_v32 = vmov 0  }
  0x63   : > { %1525 = vset.pattern.permute.xlu1 %v1561_v32  ;;  %1526 = vset.pattern.permute.xlu0 %v1561_v32 }
  0x68   : > { %1140 = vrot.lane.b32.xlu0 %v1136_v34, %s1560_s8 }
  0x6a   : > { %1144 = vrot.lane.b32.xlu1 %v1138_v35, %s1560_s8  ;;  %1037 = vrot.lane.b32.xlu2 %v1033_v33, %s1559_s7 }
  0x70   : > { %608 = vrot.lane.b32.xlu0 %v606_v56, %s1554_s27 }
  0x72   : > { %1142 = vrot.lane.b32.xlu1 %v1137_v36, %s1560_s8  ;;  %1146 = vrot.lane.b32.xlu2 %v1139_v37, %s1560_s8 }
  0x78   : > { %917 = vrot.lane.b32.xlu0 %v915_v0, %s1557_s30 }
  0x7a   : > { %711 = vrot.lane.b32.xlu1 %v709_v63, %s1555_s28  ;;  %505 = vrot.lane.b32.xlu2 %v503_v15, %s1553_s26 }
  0x80   : > { %1226 = vrot.lane.b32.xlu0 %v1224_v6, %s1560_s8 }
  0x82   : > { %1020 = vrot.lane.b32.xlu1 %v1018_v5, %s1558_s6  ;;  %814 = vrot.lane.b32.xlu2 %v812_v22, %s1556_s29  ;;  %v1562_v22 = vmov 0.0  }
  0x84   : > { %v523_v38 = vpop.permute.xlu2 %522 }
  0x8a   : > { %v348_v40 = vpop.permute.xlu0 %347  ;;  %1123 = vrot.lane.b32.xlu2 %v1121_v30, %s1559_s7  ;;  %1235 = vperm.xlu1 %1525, %v1232_v31  }
  0x8b   : > { %v344_v41 = vpop.permute.xlu1 %343 }
  0x8c   : > { %v525_v42 = vpop.permute.xlu2 %524 }
  0x8d   : > { %v531_v46 = vsel %vm530_vm3, %v523_v38, %v525_v42 }
  0x92   : > { %v350_v43 = vpop.permute.xlu0 %349 }
  0x93   : > { %v346_v44 = vpop.permute.xlu1 %345  ;;  %v354_v45 = vsel %vm351_vm2, %v348_v40, %v350_v43  ;;  %v327_v43 = vld [vmem:[%s1843_s2 + $0x40] sm:$0xff] }
  0x94   : > { %v352_v47 = vsel %vm351_vm2, %v344_v41, %v346_v44  ;;  %v353_v48 = vsel %vm351_vm2, %v346_v44, %v348_v40  ;;  %1435 = vmatpush.msk.msra.mxu2 %vm359_vm0, %v354_v45  ;;  %v630_v49 = vpop.permute.xlu2 %629 }
  0x95   : > { %1431 = vmatpush.msk.msra.mxu0 %vm359_vm0, %v352_v47  ;;  %1433 = vmatpush.msk.msra.mxu1 %vm359_vm0, %v353_v48 }
  0x96   : > { %1443 = vmatpush.msk.msrb.mxu2 %vm359_vm0, %v531_v46  ;;  %1432 = vmatmul.msk.f32.vlgmr.msra.gmra.mxu0 %vm355_vm1, %v320_v50 }
  0x97   : > { %1439 = vmatpush.msk.msrb.mxu0 %vm359_vm0, %v1633_v9  ;;  %1434 = vmatmul.msk.f32.vlgmr.msra.gmra.mxu1 %vm355_vm1, %v320_v50 }
  0x98   : > { %1436 = vmatmul.msk.f32.vlgmr.msra.gmra.mxu2 %vm355_vm1, %v320_v50  ;;  %1441 = vmatpush.msk.msrb.mxu1 %vm359_vm0, %v1626_v7  ;;  %v330_v50 = vld [vmem:[%s1712_s22] sm:$0x7] }
  0x9a   : > { %v527_v51 = vpop.permute.xlu0 %526 }
  0x9b   : > { %v532_v52 = vsel %vm530_vm3, %v525_v42, %v527_v51 }
  0x9c   : > { %1445 = vmatpush.msk.msrb.mxu3 %vm359_vm0, %v532_v52  ;;  %v632_v53 = vpop.permute.xlu2 %631 }
  0x9d   : > { %v636_v55 = vsel %vm633_vm4, %v630_v49, %v632_v53  ;;  %1446 = vmatmul.msk.f32.vlgmr.msrb.gmra.mxu3 %vm355_vm1, %v321_v54 }
  0x9e   : > { %1453 = vmatpush.msk.msra.mxu3 %vm359_vm0, %v636_v55  ;;  %1440 = vmatmul.msk.f32.vlgmr.msrb.gmra.mxu0 %vm355_vm1, %v319_v39 }
  0x9f   : > { %1442 = vmatmul.msk.f32.vlgmr.msrb.gmra.mxu1 %vm355_vm1, %v319_v39 }
  0xa0   : > { %1444 = vmatmul.msk.f32.vlgmr.msrb.gmra.mxu2 %vm355_vm1, %v321_v54 }
  0xa2   : > { %v529_v57 = vpop.permute.xlu0 %528 }
  0xa3   : > { %v533_v58 = vsel %vm530_vm3, %v527_v51, %v529_v57 }
  0xa4   : > { %v628_v59 = vpop.permute.xlu1 %627  ;;  %1447 = vmatpush.msk.msra.mxu0 %vm359_vm0, %v533_v58  ;;  %v729_v60 = vpop.permute.xlu2 %728 }
  0xa5   : > { %v635_v62 = vsel %vm633_vm4, %v628_v59, %v630_v49  ;;  %1454 = vmatmul.msk.f32.vlgmr.msra.gmra.mxu3 %vm355_vm1, %v322_v61 }
  0xa6   : > { %1451 = vmatpush.msk.msra.mxu2 %vm359_vm0, %v635_v62  ;;  %1448 = vmatmul.msk.f32.vlgmr.msra.gmra.mxu0 %vm355_vm1, %v321_v54 }
  0xa8   : > { %1452 = vmatmul.msk.f32.vlgmr.msra.gmra.mxu2 %vm355_vm1, %v322_v61 }
  0xaa   : > { %v733_v1 = vpop.permute.xlu0 %732 }
  0xac   : > { %v626_v2 = vpop.permute.xlu1 %625  ;;  %v834_v3 = vpop.permute.xlu2 %833 }
  0xad   : > { %v634_v4 = vsel %vm633_vm4, %v626_v2, %v628_v59 }
  0xae   : > { %1449 = vmatpush.msk.msra.mxu1 %vm359_vm0, %v634_v4 }
  0xaf   : > { %1450 = vmatmul.msk.f32.vlgmr.msra.gmra.mxu1 %vm355_vm1, %v322_v61 }
  0xb2   : > { %v731_v7 = vpop.permute.xlu0 %730 }
  0xb3   : > { %v737_v9 = vsel %vm736_vm5, %v729_v60, %v731_v7  ;;  %v738_v10 = vsel %vm736_vm5, %v731_v7, %v733_v1 }
  0xb4   : > { %v735_v11 = vpop.permute.xlu1 %734  ;;  %1457 = vmatpush.msk.msrb.mxu1 %vm359_vm0, %v738_v10  ;;  %1455 = vmatpush.msk.msrb.mxu0 %vm359_vm0, %v737_v9  ;;  %v836_v12 = vpop.permute.xlu2 %835 }
  0xb5   : > { %v739_v13 = vsel %vm736_vm5, %v733_v1, %v735_v11  ;;  %v841_v14 = vsel %vm839_vm6, %v834_v3, %v836_v12  ;;  %1456 = vmatmul.msk.f32.vlgmr.msrb.gmra.mxu0 %vm355_vm1, %v323_v8 }
  0xb6   : > { %1459 = vmatpush.msk.msrb.mxu2 %vm359_vm0, %v739_v13  ;;  %1463 = vmatpush.msk.msra.mxu0 %vm359_vm0, %v841_v14 }
  0xb7   : > { %1458 = vmatmul.msk.f32.vlgmr.msrb.gmra.mxu1 %vm355_vm1, %v323_v8  ;;  %1460 = vmatmul.msk.f32.vlgmr.msrb.gmra.mxu2 %vm355_vm1, %v323_v8 }
  0xba   : > { %v838_v16 = vpop.permute.xlu0 %837 }
  0xbb   : > { %v842_v18 = vsel %vm839_vm6, %v836_v12, %v838_v16 }
  0xbc   : > { %v832_v19 = vpop.permute.xlu1 %831  ;;  %v1040_v20 = vpop.permute.xlu2 %1039  ;;  %1465 = vmatpush.msk.msra.mxu1 %vm359_vm0, %v842_v18 }
  0xbd   : > { %v840_v21 = vsel %vm839_vm6, %v832_v19, %v834_v3  ;;  %1464 = vmatmul.msk.f32.vlgmr.msra.gmra.mxu0 %vm355_vm1, %v324_v17  ;;  %v1271_v19 = vlaneseq }
  0xbe   : > { %1461 = vmatpush.msk.msrb.mxu3 %vm359_vm0, %v840_v21 }
  0xbf   : > { %1462 = vmatmul.msk.f32.vlgmr.msrb.gmra.mxu3 %vm355_vm1, %v324_v17  ;;  %1466 = vmatmul.msk.f32.vlgmr.msra.gmra.mxu1 %vm355_vm1, %v324_v17  ;;  %vm1273_vm11 = vcmp.lt.s32.totalorder %v1271_v19, 384 }
  0xc2   : > { %v935_v23 = vpop.permute.xlu0 %934 }
  0xc4   : > { %v937_v24 = vpop.permute.xlu1 %936  ;;  %v1038_v26 = vpop.permute.xlu2 %1037 }
  0xc5   : > { %v943_v28 = vsel %vm942_vm7, %v935_v23, %v937_v24  ;;  %v1046_v29 = vsel %vm1045_vm8, %v1038_v26, %v1040_v20 }
  0xc6   : > { %1467 = vmatpush.msk.msra.mxu2 %vm359_vm0, %v943_v28  ;;  %1473 = vmatpush.msk.msrb.mxu1 %vm359_vm0, %v1046_v29 }
  0xc7   : > { %1468 = vmatmul.msk.f32.vlgmr.msra.gmra.mxu2 %vm355_vm1, %v325_v25  ;;  %1474 = vmatmul.msk.f32.vlgmr.msrb.gmra.mxu1 %vm355_vm1, %v326_v27 }
  0xca   : > { %v1042_v33 = vpop.permute.xlu0 %1041 }
  0xcb   : > { %v1047_v34 = vsel %vm1045_vm8, %v1040_v20, %v1042_v33 }
  0xcc   : > { %v939_v35 = vpop.permute.xlu1 %938  ;;  %1475 = vmatpush.msk.msrb.mxu2 %vm359_vm0, %v1047_v34  ;;  %v1147_v41 = vpop.permute.xlu2 %1146 }
  0xcd   : > { %v944_v36 = vsel %vm942_vm7, %v937_v24, %v939_v35  ;;  %v460_v24 = vpop.f32.mrf.mxu3 }
  0xce   : > { %1469 = vmatpush.msk.msra.mxu3 %vm359_vm0, %v944_v36 }
  0xcf   : > { %1470 = vmatmul.msk.f32.vlgmr.msra.gmra.mxu3 %vm355_vm1, %v325_v25  ;;  %1476 = vmatmul.msk.f32.vlgmr.msrb.gmra.mxu2 %vm355_vm1, %v326_v27 }
  0xd2   : > { %v1044_v37 = vpop.permute.xlu0 %1043 }
  0xd3   : > { %v1048_v38 = vsel %vm1045_vm8, %v1042_v33, %v1044_v37 }
  0xd4   : > { %v941_v39 = vpop.permute.xlu1 %940  ;;  %1477 = vmatpush.msk.msrb.mxu3 %vm359_vm0, %v1048_v38  ;;  %v506_v49 = vpop.permute.xlu2 %505 }
  0xd5   : > { %v945_v40 = vsel %vm942_vm7, %v939_v35, %v941_v39  ;;  %v507_v51 = vrot.slane %v506_v49, 1 }
  0xd6   : > { %1471 = vmatpush.msk.msrb.mxu0 %vm359_vm0, %v945_v40 }
  0xd7   : > { %1472 = vmatmul.msk.f32.vlgmr.msrb.gmra.mxu0 %vm355_vm1, %v325_v25  ;;  %1478 = vmatmul.msk.f32.vlgmr.msrb.gmra.mxu3 %vm355_vm1, %v326_v27  ;;  %v508_v52 = vsel %vm351_vm2, %v506_v49, %v507_v51 }
  0xd8   : > { %v510_v54 = vadd.f32 %v508_v52, %v330_v50 }
  0xda   : > { %v1141_v45 = vpop.permute.xlu0 %1140 }
  0xdc   : > { %v1145_v42 = vpop.permute.xlu1 %1144  ;;  %v815_v60 = vpop.permute.xlu2 %814 }
  0xdd   : > { %v1151_v44 = vsel %vm1148_vm9, %v1145_v42, %v1147_v41  ;;  %v816_v62 = vrot.slane %v815_v60, 1 }
  0xde   : > { %1483 = vmatpush.msk.msra.mxu2 %vm359_vm0, %v1151_v44 }
  0xdf   : > { %1484 = vmatmul.msk.f32.vlgmr.msra.gmra.mxu2 %vm355_vm1, %v327_v43  ;;  %v817_v0 = vsel %vm736_vm5, %v815_v60, %v816_v62 }
  0xe2   : > { %v609_v53 = vpop.permute.xlu0 %608 }
  0xe3   : > { %v610_v55 = vrot.slane %v609_v53, 1 }
  0xe4   : > { %v1143_v46 = vpop.permute.xlu1 %1142  ;;  %v1124_v8 = vpop.permute.xlu2 %1123 }
  0xe5   : > { %v1150_v47 = vsel %vm1148_vm9, %v1143_v46, %v1145_v42  ;;  %v1149_v48 = vsel %vm1148_vm9, %v1141_v45, %v1143_v46  ;;  %v611_v56 = vsel %vm530_vm3, %v609_v53, %v610_v55  ;;  %v1125_v10 = vrot.slane %v1124_v8, 1 }
  0xe6   : > { %1479 = vmatpush.msk.msra.mxu0 %vm359_vm0, %v1149_v48  ;;  %1481 = vmatpush.msk.msra.mxu1 %vm359_vm0, %v1150_v47  ;;  %v613_v58 = vadd.f32 %v611_v56, %v510_v54 }
  0xe7   : > { %1480 = vmatmul.msk.f32.vlgmr.msra.gmra.mxu0 %vm355_vm1, %v327_v43  ;;  %1482 = vmatmul.msk.f32.vlgmr.msra.gmra.mxu1 %vm355_vm1, %v327_v43  ;;  %v1126_v12 = vsel %vm1045_vm8, %v1124_v8, %v1125_v10 }
  0xea   : > { %v918_v1 = vpop.permute.xlu0 %917 }
  0xeb   : > { %v919_v3 = vrot.slane %v918_v1, 1 }
  0xec   : > { %v712_v57 = vpop.permute.xlu1 %711 }
  0xed   : > { %v713_v59 = vrot.slane %v712_v57, 1  ;;  %v920_v4 = vsel %vm839_vm6, %v918_v1, %v919_v3 }
  0xef   : > { %v714_v61 = vsel %vm633_vm4, %v712_v57, %v713_v59 }
  0xf0   : > { %v716_v63 = vadd.f32 %v714_v61, %v613_v58 }
  0xf2   : > { %v819_v2 = vadd.f32 %v817_v0, %v716_v63  ;;  %v1227_v13 = vpop.permute.xlu0 %1226 }
  0xf3   : > { %v1228_v15 = vrot.slane %v1227_v13, 1 }
  0xf4   : > { %v1021_v5 = vpop.permute.xlu1 %1020  ;;  %v922_v6 = vadd.f32 %v920_v4, %v819_v2 }
  0xf5   : > { %v1022_v7 = vrot.slane %v1021_v5, 1  ;;  %v1229_v16 = vsel %vm1148_vm9, %v1227_v13, %v1228_v15 }
  0xf7   : > { %v1023_v9 = vsel %vm942_vm7, %v1021_v5, %v1022_v7 }
  0xf8   : > { %v1025_v11 = vadd.f32 %v1023_v9, %v922_v6 }
  0xfa   : > { %v1128_v14 = vadd.f32 %v1126_v12, %v1025_v11 }
  0xfc   : > { %v1231_v17 = vadd.f32 %v1229_v16, %v1128_v14  ;;  %v1236_v8 = vpop.permute.xlu1 %1235 }
  0xfe   : > { %vm1241_vm10 = vcmp.ne.f32.partialorder %v1231_v17, 0.0 }
  0xff   : > { %v1485_v23 = vsel %vm1241_vm10, 1.0, %v1562_v22  ;;  %v1242_v40 = vsel %vm1241_vm10, %v1231_v17, 1.0  ;;  %v1257_v5 = vsel %vm1241_vm10, 1, %v1561_v32 }
 0x100   : > { %1275 = vst.msk [vmem:[%s317_s15] sm:$0x7] %vm1273_vm11, %v1485_v23  ;;  %1527 = vrcp.f32 %v1242_v40  ;;  %v1260_v13 = vperm.slane %v1257_v5, 2  ;;  %v1258_v22 = vperm.slane %v1257_v5, 0 }
 0x102   : > { %vm1263_vm12 = vcmp.eq.s32.totalorder %v1260_v13, 1  ;;  %vm1261_vm14 = vcmp.eq.s32.totalorder %v1258_v22, 1 }
 0x106   : > { %v1528_v51 = vpop.eup %1527 }
 0x107   : > { %v1244_v55 = vmul.f32 %v1528_v51, %v1242_v40 }
 0x109   : > { %v1245_v63 = vsub.f32 2.0, %v1244_v55 }
 0x10b   : > { %v1246_v4 = vmul.f32 %v1528_v51, %v1245_v63 }
 0x113   : > { %v383_v18 = vpop.f32.mrf.mxu0 }
 0x114   : > { %v403_v20 = vpop.f32.mrf.mxu1  ;;  %v461_v41 = vadd.f32 %v460_v24, %v383_v18  ;;  %v1250_v18 = vperm.slane %v1246_v4, 2  ;;  %v1248_v24 = vperm.slane %v1246_v4, 0 }
 0x11b   : > { %v423_v21 = vpop.f32.mrf.mxu2  ;;  %v480_v25 = vpop.f32.mrf.mxu0 }
 0x11c   : > { %v500_v26 = vpop.f32.mrf.mxu1  ;;  %v481_v38 = vadd.f32 %v480_v25, %v403_v20  ;;  %v1249_v20 = vperm.slane %v1246_v4, 1 }
 0x11d   : > { %v501_v39 = vadd.f32 %v500_v26, %v423_v21  ;;  %v1259_v21 = vperm.slane %v1257_v5, 1 }
 0x11f   : > { %vm1262_vm13 = vcmp.eq.s32.totalorder %v1259_v21, 1 }
 0x120   : > { %v580_v28 = vpop.f32.mrf.mxu3 }
 0x121   : > { %v604_v42 = vadd.f32 %v580_v28, %v481_v38 }
 0x123   : > { %v560_v27 = vpop.f32.mrf.mxu2  ;;  %v600_v29 = vpop.f32.mrf.mxu0 }
 0x124   : > { %v605_v43 = vadd.f32 %v600_v29, %v501_v39  ;;  %v603_v45 = vadd.f32 %v560_v27, %v461_v41 }
 0x128   : > { %v703_v33 = vpop.f32.mrf.mxu3 }
 0x129   : > { %v708_v50 = vadd.f32 %v703_v33, %v605_v43 }
 0x12b   : > { %v683_v31 = vpop.f32.mrf.mxu2 }
 0x12c   : > { %v663_v30 = vpop.f32.mrf.mxu1  ;;  %v707_v49 = vadd.f32 %v683_v31, %v604_v42 }
 0x12d   : > { %v706_v52 = vadd.f32 %v663_v30, %v603_v45 }
 0x132   : > { %v766_v34 = vpop.f32.mrf.mxu0 }
 0x133   : > { %v809_v57 = vadd.f32 %v766_v34, %v706_v52 }
 0x134   : > { %v786_v35 = vpop.f32.mrf.mxu1 }
 0x135   : > { %v810_v53 = vadd.f32 %v786_v35, %v707_v49 }
 0x13a   : > { %v806_v36 = vpop.f32.mrf.mxu2  ;;  %v889_v46 = vpop.f32.mrf.mxu0 }
 0x13b   : > { %v811_v54 = vadd.f32 %v806_v36, %v708_v50  ;;  %v913_v60 = vadd.f32 %v889_v46, %v810_v53 }
 0x13c   : > { %v909_v47 = vpop.f32.mrf.mxu1 }
 0x13d   : > { %v914_v61 = vadd.f32 %v909_v47, %v811_v54 }
 0x142   : > { %v869_v37 = vpop.f32.mrf.mxu3 }
 0x143   : > { %v912_v62 = vadd.f32 %v869_v37, %v809_v57 }
 0x144   : > { %v1075_v58 = vpop.f32.mrf.mxu1 }
 0x14a   : > { %v972_v44 = vpop.f32.mrf.mxu2 }
 0x14b   : > { %v1015_v1 = vadd.f32 %v972_v44, %v912_v62 }
 0x14d   : > { %v1118_v9 = vadd.f32 %v1075_v58, %v1015_v1 }
 0x152   : > { %v992_v48 = vpop.f32.mrf.mxu3  ;;  %v1095_v56 = vpop.f32.mrf.mxu2 }
 0x153   : > { %v1016_v2 = vadd.f32 %v992_v48, %v913_v60 }
 0x154   : > { %v1012_v59 = vpop.f32.mrf.mxu0 }
 0x155   : > { %v1017_v3 = vadd.f32 %v1012_v59, %v914_v61  ;;  %v1119_v10 = vadd.f32 %v1095_v56, %v1016_v2 }
 0x15a   : > { %v1115_v0 = vpop.f32.mrf.mxu3 }
 0x15b   : > { %v1120_v6 = vadd.f32 %v1115_v0, %v1017_v3 }
 0x162   : > { %v1218_v7 = vpop.f32.mrf.mxu2 }
 0x163   : > { %v1223_v11 = vadd.f32 %v1218_v7, %v1120_v6 }
 0x164   : > { %v1198_v12 = vpop.f32.mrf.mxu1  ;;  %v1178_v14 = vpop.f32.mrf.mxu0 }
 0x165   : > { %v1222_v15 = vadd.f32 %v1198_v12, %v1119_v10  ;;  %v1240_v16 = vadd.f32 %v1236_v8, %v1223_v11  ;;  %v1221_v19 = vadd.f32 %v1178_v14, %v1118_v9 }
 0x167   : > { %v1239_v32 = vadd.f32 %v1236_v8, %v1222_v15  ;;  %v1256_v17 = vmul.f32 %v1250_v18, %v1240_v16  ;;  %v1238_v23 = vadd.f32 %v1236_v8, %v1221_v19 }
 0x169   : > { %v1255_v25 = vmul.f32 %v1249_v20, %v1239_v32  ;;  %v1266_v26 = vsel %vm1263_vm12, %v1256_v17, 0.0  ;;  %v1254_v27 = vmul.f32 %v1248_v24, %v1238_v23 }
 0x16a   : > { %1269 = vst [vmem:[%s308_s23 + $0x10] sm:$0xff] %v1266_v26 }
 0x16b   : > { %v1265_v28 = vsel %vm1262_vm13, %v1255_v25, 0.0  ;;  %v1264_v29 = vsel %vm1261_vm14, %v1254_v27, 0.0 }
 0x16c   : > { %1268 = vst [vmem:[%s308_s23 + $0x8] sm:$0xff] %v1265_v28 }
 0x16d   : > { %1267 = vst [vmem:[%s308_s23] sm:$0xff] %v1264_v29 }
 0x16e PF: > { %s16_s20 = sadd.s32 1, %s1551_s20   ;;  %s1847_s18 = smov %s1547_s19 }
 0x16f   : > { %p13_p5 = scmp.ge.s32.totalorder %s16_s20, 4   ;;  %s1848_s19 = smov %s1850_s21 }
 0x171   :  { %15 = sbr.rel (!%p13_p5) target bundleno = 2 (0x2), region = 90 }

</bundles_post_ra>
